<compile_context>
chip_gen: v7x
topology: tpu7x:2x2x1
jax: 0.10.0
libtpu: 0.0.40
codegen_flags: <defaults>
</compile_context>

<pallas_src>
import functools
import math

import jax
import jax.numpy as jnp
from jax.experimental import pallas as pl
from jax.experimental.pallas import tpu as pltpu


# ----------------------------------------------------------------------------
# Pallas kernel: K/N-tiled matmul  out(M,N) = X(M,K) @ Op(K,N), bf16 in, f32 acc
# ----------------------------------------------------------------------------
def _matmul_kernel(x_ref, w_ref, o_ref, acc_ref):
    k = pl.program_id(1)

    @pl.when(k == 0)
    def _init():
        acc_ref[...] = jnp.zeros_like(acc_ref)

    acc_ref[...] += jnp.dot(x_ref[...], w_ref[...],
                            preferred_element_type=jnp.float32)

    @pl.when(k == pl.num_programs(1) - 1)
    def _store():
        o_ref[...] = acc_ref[...].astype(o_ref.dtype)


def _pick_tile(n, target=512):
    """Largest multiple of 128 <= target that divides n, else the full dim."""
    if n <= target:
        return n
    if n % 128 != 0:
        return n
    best, t = 128, 128
    while t <= target:
        if n % t == 0:
            best = t
        t += 128
    return best


def _matmul_op(x2d, op2d):
    """out = x2d @ op2d on the MXU (bf16 operands, f32 accumulation, f32 output)."""
    M, K = x2d.shape
    K2, N = op2d.shape
    assert K == K2
    tk = _pick_tile(K)
    tn = _pick_tile(N)
    grid = (N // tn, K // tk)

    x_b = x2d.astype(jnp.bfloat16)
    w_b = op2d.astype(jnp.bfloat16)

    # double-buffered input tiles + f32 out tile + f32 accumulator, with headroom
    tile_bytes = 2 * (M * tk * 2 + tk * tn * 2 + M * tn * 4) + M * tn * 4
    vmem_limit = int(min(60 * 2**20, max(32 * 2**20, 6 * tile_bytes)))

    return pl.pallas_call(
        _matmul_kernel,
        out_shape=jax.ShapeDtypeStruct((M, N), jnp.float32),
        grid_spec=pltpu.PrefetchScalarGridSpec(
            num_scalar_prefetch=0,
            grid=grid,
            in_specs=[pl.BlockSpec((M, tk), lambda j, k: (0, k)),
                      pl.BlockSpec((tk, tn), lambda j, k: (k, j))],
            out_specs=pl.BlockSpec((M, tn), lambda j, k: (0, j)),
            scratch_shapes=[pltpu.VMEM((M, tn), jnp.float32)]),
        compiler_params=pltpu.CompilerParams(
            dimension_semantics=("parallel", "arbitrary"),
            vmem_limit_bytes=vmem_limit),
    )(x_b, w_b)


# ----------------------------------------------------------------------------
# Operator construction (plain-JAX glue; depends only on the angle, not on data)
# ----------------------------------------------------------------------------
def _pad_sizes(H, W, pad_coef):
    ph, pw = int(H * pad_coef), int(W * pad_coef)
    # PyTorch reflect padding requires pad < size; the reflect-index map below assumes it too.
    assert ph < H and pw < W, "pad_coef must give int(dim * pad_coef) < dim (reflect padding)"
    return ph, pw


def _reflect_index(idx, n):
    """PyTorch 'reflect' padding index map (no edge repeat); valid for |pad| < n."""
    if n == 1:
        return jnp.zeros_like(idx)
    period = 2 * (n - 1)
    m = jnp.mod(idx, period)
    return jnp.where(m >= n, period - m, m)


def _bilinear_taps(sy, sx, Hs, Ws):
    """4 bilinear corner taps (yi, xi, weight) for sampling at (sy, sx); zero weight OOB."""
    y0 = jnp.floor(sy)
    x0 = jnp.floor(sx)
    wy = sy - y0
    wx = sx - x0
    taps = []
    for yc, xc, w in ((y0, x0, (1.0 - wy) * (1.0 - wx)),
                      (y0, x0 + 1.0, (1.0 - wy) * wx),
                      (y0 + 1.0, x0, wy * (1.0 - wx)),
                      (y0 + 1.0, x0 + 1.0, wy * wx)):
        in_bounds = (yc >= 0) & (yc <= Hs - 1) & (xc >= 0) & (xc <= Ws - 1)
        yi = jnp.clip(yc, 0, Hs - 1).astype(jnp.int32)
        xi = jnp.clip(xc, 0, Ws - 1).astype(jnp.int32)
        taps.append((yi, xi, jnp.where(in_bounds, w, 0.0)))
    return taps


def _rot_consts(angle_deg, H, W, ph, pw):
    Hp, Wp = H + 2 * ph, W + 2 * pw
    theta = angle_deg * (math.pi / 180.0)
    c, s = jnp.cos(theta), jnp.sin(theta)
    cy, cx = (Hp - 1) / 2.0, (Wp - 1) / 2.0     # kornia center convention, align_corners=True
    return Hp, Wp, c, s, cy, cx


def _build_transform_operator_T(angle_deg, H, W, ph, pw):
    """(H*W, Hp*Wp):  rotate(+angle, reflect_pad(x))_flat = x_flat @ T   (right-mult layout)."""
    Hp, Wp, c, s, cy, cx = _rot_consts(angle_deg, H, W, ph, pw)
    yo, xo = jnp.meshgrid(jnp.arange(Hp, dtype=jnp.float32),
                          jnp.arange(Wp, dtype=jnp.float32), indexing="ij")
    out_col = jnp.arange(Hp * Wp, dtype=jnp.int32)
    dy, dx = yo - cy, xo - cx
    # kornia/OpenCV convention: +angle is CCW; sampling uses the inverse rotation
    sx = c * dx - s * dy + cx
    sy = s * dx + c * dy + cy
    rows, cols, vals = [], [], []
    for yj, xj, w in _bilinear_taps(sy, sx, Hp, Wp):
        q = _reflect_index(yj - ph, H) * W + _reflect_index(xj - pw, W)
        rows.append(q.reshape(-1))
        cols.append(out_col)
        vals.append(w.reshape(-1))
    op = jnp.zeros((H * W, Hp * Wp), jnp.float32)
    return op.at[jnp.concatenate(rows), jnp.concatenate(cols)].add(jnp.concatenate(vals))


def _build_inverse_operator_T(angle_deg, H, W, ph, pw):
    """(Hp*Wp, H*W):  crop(rotate(-angle, y))_flat = y_flat @ Tinv   (right-mult layout)."""
    Hp, Wp, c, s, cy, cx = _rot_consts(angle_deg, H, W, ph, pw)
    oy, ox = jnp.meshgrid(jnp.arange(H, dtype=jnp.float32),
                          jnp.arange(W, dtype=jnp.float32), indexing="ij")
    out_col = jnp.arange(H * W, dtype=jnp.int32)
    dy, dx = (oy + ph) - cy, (ox + pw) - cx
    sx = c * dx + s * dy + cx          # -angle rotation sampling
    sy = -s * dx + c * dy + cy
    rows, cols, vals = [], [], []
    for yi, xi, w in _bilinear_taps(sy, sx, Hp, Wp):
        p = yi * Wp + xi
        rows.append(p.reshape(-1))
        cols.append(out_col)
        vals.append(w.reshape(-1))
    op = jnp.zeros((Hp * Wp, H * W), jnp.float32)
    return op.at[jnp.concatenate(rows), jnp.concatenate(cols)].add(jnp.concatenate(vals))


def _build_folded_operator(angle_deg, H, W, ph, pw):
    """(H*W, H*W) folded operator F = T @ Tinv (right-mult layout), i.e. the wrapper with an
    identity impl:  out_flat = x_flat @ F.  Built directly from the composed <=16 bilinear
    taps per output pixel -- no dense intermediates and no operator-operator matmul."""
    Hp, Wp, c, s, cy, cx = _rot_consts(angle_deg, H, W, ph, pw)
    oy, ox = jnp.meshgrid(jnp.arange(H, dtype=jnp.float32),
                          jnp.arange(W, dtype=jnp.float32), indexing="ij")
    out_col = jnp.arange(H * W, dtype=jnp.int32)
    # inverse stage (-angle), destination = crop window inside the padded frame
    dy, dx = (oy + ph) - cy, (ox + pw) - cx
    sx_inv = c * dx + s * dy + cx
    sy_inv = -s * dx + c * dy + cy
    rows, cols, vals = [], [], []
    for yi, xi, w_inv in _bilinear_taps(sy_inv, sx_inv, Hp, Wp):
        # forward stage (+angle) sampled at the integer padded-rotated tap (yi, xi)
        dy2, dx2 = yi.astype(jnp.float32) - cy, xi.astype(jnp.float32) - cx
        sx_fwd = c * dx2 - s * dy2 + cx
        sy_fwd = s * dx2 + c * dy2 + cy
        for yj, xj, w_fwd in _bilinear_taps(sy_fwd, sx_fwd, Hp, Wp):
            q = _reflect_index(yj - ph, H) * W + _reflect_index(xj - pw, W)
            rows.append(q.reshape(-1))
            cols.append(out_col)
            vals.append((w_inv * w_fwd).reshape(-1))
    op = jnp.zeros((H * W, H * W), jnp.float32)
    return op.at[jnp.concatenate(rows), jnp.concatenate(cols)].add(jnp.concatenate(vals))


# ----------------------------------------------------------------------------
# Forward wrappers
# ----------------------------------------------------------------------------
@functools.partial(jax.jit, static_argnames=("H", "W", "pad_coef"))
def _fused_forward_flat(x_flat, angle_deg, *, H, W, pad_coef):
    ph, pw = _pad_sizes(H, W, pad_coef)
    op = _build_folded_operator(angle_deg, H, W, ph, pw)        # (HW, HW)
    return _matmul_op(x_flat, op)


@functools.partial(jax.jit, static_argnames=("H", "W", "pad_coef"))
def _transform_flat(x_flat, angle_deg, *, H, W, pad_coef):
    ph, pw = _pad_sizes(H, W, pad_coef)
    op = _build_transform_operator_T(angle_deg, H, W, ph, pw)   # (HW, HpWp)
    return _matmul_op(x_flat, op)


@functools.partial(jax.jit, static_argnames=("H", "W", "pad_coef"))
def _inverse_flat(y_flat, angle_deg, *, H, W, pad_coef):
    ph, pw = _pad_sizes(H, W, pad_coef)
    op = _build_inverse_operator_T(angle_deg, H, W, ph, pw)     # (HpWp, HW)
    return _matmul_op(y_flat, op)


def fused_forward(x, angle_deg, *, pad_coef=0.5):
    """inverse_transform(transform(x)) with an identity impl: one folded-operator matmul."""
    B, C, H, W = x.shape
    out = _fused_forward_flat(x.reshape(B * C, H * W), angle_deg,
                              H=H, W=W, pad_coef=pad_coef)
    return out.reshape(B, C, H, W).astype(x.dtype)


def transform(x, angle_deg, *, pad_coef=0.5):
    """Reflect-pad + rotate(+angle): (B, C, H, W) -> (B, C, Hp, Wp)."""
    B, C, H, W = x.shape
    ph, pw = _pad_sizes(H, W, pad_coef)
    Hp, Wp = H + 2 * ph, W + 2 * pw
    y = _transform_flat(x.reshape(B * C, H * W), angle_deg, H=H, W=W, pad_coef=pad_coef)
    return y.reshape(B, C, Hp, Wp).astype(x.dtype)


def inverse_transform(y_padded_rotated, orig_x, *args, **kwargs):
    """Rotate(-angle) + crop back to orig_x's spatial shape."""
    angle_deg = args[0] if args else kwargs.pop("angle_deg")
    pad_coef = kwargs.pop("pad_coef", 0.5)
    B, C, Hp, Wp = y_padded_rotated.shape
    H, W = orig_x.shape[2], orig_x.shape[3]
    out = _inverse_flat(y_padded_rotated.reshape(B * C, Hp * Wp), angle_deg,
                        H=H, W=W, pad_coef=pad_coef)
    return out.reshape(B, C, H, W).astype(y_padded_rotated.dtype)


def _split_rows(a, sizes):
    outs, off = [], 0
    for s in sizes:
        outs.append(a[off:off + s])
        off += s
    return outs


class LearnableSpatialTransformWrapper:
    """JAX/Pallas port of the PyTorch wrapper (forward pass only)."""

    def __init__(self, impl=None, pad_coef=0.5, angle_init_range=80.0, *, key):
        self.impl = impl                      # None -> identity inner module (fused path)
        self.pad_coef = float(pad_coef)
        # matches `torch.rand(1) * angle_init_range` (degrees); learnable scalar parameter.
        # TODO(synk): gradient/optimizer plumbing for the angle parameter is out of scope here.
        self.angle = jax.random.uniform(key, (), jnp.float32) * angle_init_range

    def __call__(self, x):
        if isinstance(x, (tuple, list)):
            return self._forward_tuple(tuple(x))
        if self.impl is None:
            return fused_forward(x, self.angle, pad_coef=self.pad_coef)
        return inverse_transform(self.impl(transform(x, self.angle, pad_coef=self.pad_coef)),
                                 x, self.angle, pad_coef=self.pad_coef)

    def _forward_tuple(self, xs):
        shapes = {e.shape[2:] for e in xs}
        if len(shapes) != 1:
            # heterogeneous spatial shapes: per-element transforms, impl still gets the tuple
            if self.impl is None:
                return tuple(fused_forward(e, self.angle, pad_coef=self.pad_coef) for e in xs)
            xs_t = tuple(transform(e, self.angle, pad_coef=self.pad_coef) for e in xs)
            ys_t = self.impl(xs_t)
            return tuple(inverse_transform(y, e, self.angle, pad_coef=self.pad_coef)
                         for y, e in zip(ys_t, xs))

        # same spatial shape: concatenate along B*C so one pallas_call per stage amortises
        # the operator DMA over all tuple elements (more MXU rows, fewer launches).
        H, W = xs[0].shape[2], xs[0].shape[3]
        sizes = [e.shape[0] * e.shape[1] for e in xs]
        big = jnp.concatenate([e.reshape(s, H * W) for e, s in zip(xs, sizes)], axis=0)

        if self.impl is None:
            out = _fused_forward_flat(big, self.angle, H=H, W=W, pad_coef=self.pad_coef)
            return tuple(o.reshape(e.shape).astype(e.dtype)
                         for o, e in zip(_split_rows(out, sizes), xs))

        ph, pw = _pad_sizes(H, W, self.pad_coef)
        Hp, Wp = H + 2 * ph, W + 2 * pw
        big_t = _transform_flat(big, self.angle, H=H, W=W, pad_coef=self.pad_coef)
        xs_t = tuple(o.reshape(e.shape[0], e.shape[1], Hp, Wp).astype(e.dtype)
                     for o, e in zip(_split_rows(big_t, sizes), xs))
        ys_t = self.impl(xs_t)
        y_sizes = [y.shape[0] * y.shape[1] for y in ys_t]
        big_y = jnp.concatenate([y.reshape(s, Hp * Wp) for y, s in zip(ys_t, y_sizes)], axis=0)
        out = _inverse_flat(big_y, self.angle, H=H, W=W, pad_coef=self.pad_coef)
        return tuple(o.reshape(y.shape[0], y.shape[1], H, W).astype(y.dtype)
                     for o, y in zip(_split_rows(out, y_sizes), ys_t))


# ----------------------------------------------------------------------------
# Self-test
# ----------------------------------------------------------------------------
if __name__ == "__main__":
    key = jax.random.PRNGKey(0)
    k_x, k_angle = jax.random.split(key)
    B, C, H, W = 2, 4, 16, 16
    x = jax.random.normal(k_x, (B, C, H, W), jnp.float32)

    wrapper = LearnableSpatialTransformWrapper(impl=None, pad_coef=0.5,
                                               angle_init_range=80.0, key=k_angle)
    y = jax.block_until_ready(wrapper(x))
    assert y.shape == x.shape, y.shape
    assert bool(jnp.all(jnp.isfinite(y)))

    # check 1: fused Pallas result vs a plain-JAX f32 dense-operator reference
    ph, pw = _pad_sizes(H, W, 0.5)
    op_ref = _build_folded_operator(wrapper.angle, H, W, ph, pw)
    y_ref = (x.reshape(B * C, H * W) @ op_ref).reshape(B, C, H, W)
    err = float(jnp.max(jnp.abs(y - y_ref)))
    assert err < 6e-2, err

    # check 2: at angle=0 the composed operator is exactly identity (bf16 input quantization only)
    y0 = jax.block_until_ready(fused_forward(x, jnp.float32(0.0), pad_coef=0.5))
    err0 = float(jnp.max(jnp.abs(y0 - x)))
    assert err0 < 2e-2, err0

    # check 3: unfused path (transform -> identity -> inverse_transform) matches the fused kernel
    y_unf = inverse_transform(transform(x, wrapper.angle, pad_coef=0.5),
                              x, wrapper.angle, pad_coef=0.5)
    y_unf = jax.block_until_ready(y_unf)
    errc = float(jnp.max(jnp.abs(y_unf - y)))
    assert errc < 1.5e-1, errc

    # check 4: tuple path (elements concatenated along B*C into one pallas_call per stage)
    x2 = jax.random.normal(jax.random.PRNGKey(1), (B, 2, H, W), jnp.float32)
    y_tup = wrapper((x, x2))
    jax.block_until_ready(y_tup)
    assert y_tup[0].shape == x.shape and y_tup[1].shape == x2.shape
    assert float(jnp.max(jnp.abs(y_tup[0] - y))) < 1e-6

    print("KERNEL_OK")
</pallas_src>

<mosaic_0001>
module attributes {stable_mosaic.version = 11 : i64} {
  func.func private @main(%arg0: i32) attributes {dimension_semantics = [#tpu.dimension_semantics<core_parallel>], iteration_bounds = array<i64: 2>, tpu.core_type = #tpu.core_type<sc_scalar_subcore>, window_params = []} {
    return
  }
}

module attributes {stable_mosaic.version = 11 : i64} {
  func.func private @main(%arg0: i32) attributes {dimension_semantics = [#tpu.dimension_semantics<core_parallel>], iteration_bounds = array<i64: 2>, tpu.core_type = #tpu.core_type<sc_scalar_subcore>, window_params = []} {
    return
  }
}

module attributes {stable_mosaic.version = 11 : i64} {
  func.func @_matmul_kernel(%arg0: i32, %arg1: i32, %arg2: memref<8x256xbf16, #tpu.memory_space<vmem>>, %arg3: memref<256x256xbf16, #tpu.memory_space<vmem>>, %arg4: memref<8x256xf32, #tpu.memory_space<vmem>>, %arg5: memref<8x256xf32, #tpu.memory_space<vmem>>) attributes {dimension_semantics = [#tpu.dimension_semantics<parallel>, #tpu.dimension_semantics<arbitrary>], iteration_bounds = array<i64: 1, 1>, scalar_prefetch = 0 : i64, scratch_operands = 1 : i64, tpu.core_type = #tpu.core_type<tc>, window_params = [{transform_indices = @transform_0, window_bounds = array<i64: 8, 256>}, {transform_indices = @transform_1, window_bounds = array<i64: 256, 256>}, {transform_indices = @transform_2, window_bounds = array<i64: 8, 256>}]} {
    %c0_i32 = arith.constant 0 : i32
    %0 = arith.cmpi eq, %arg1, %c0_i32 : i32
    %1 = arith.extui %0 : i1 to i32
    %c0_i32_0 = arith.constant 0 : i32
    %2 = arith.cmpi ne, %1, %c0_i32_0 : i32
    scf.if %2 {
      %cst_10 = arith.constant 0.000000e+00 : f32
      %12 = vector.broadcast %cst_10 : f32 to vector<8x256xf32>
      %c0_11 = arith.constant 0 : index
      %c0_12 = arith.constant 0 : index
      %13 = vector.load %arg5[%c0_11, %c0_12] : memref<8x256xf32, #tpu.memory_space<vmem>>, vector<8x256xf32>
      tpu.vector_store %arg5[%c0_11, %c0_12], %12 {strides = array<i32>} : memref<8x256xf32, #tpu.memory_space<vmem>>, vector<8x256xf32>,
    } else {
    }
    %c0 = arith.constant 0 : index
    %c0_1 = arith.constant 0 : index
    %3 = vector.load %arg5[%c0, %c0_1] : memref<8x256xf32, #tpu.memory_space<vmem>>, vector<8x256xf32>
    %c0_2 = arith.constant 0 : index
    %c0_3 = arith.constant 0 : index
    %4 = vector.load %arg2[%c0_2, %c0_3] : memref<8x256xbf16, #tpu.memory_space<vmem>>, vector<8x256xbf16>
    %c0_4 = arith.constant 0 : index
    %c0_5 = arith.constant 0 : index
    %5 = vector.load %arg3[%c0_4, %c0_5] : memref<256x256xbf16, #tpu.memory_space<vmem>>, vector<256x256xbf16>
    %cst = arith.constant dense<0.000000e+00> : vector<8x256xf32>
    %6 = tpu.matmul %4, %5, %cst {dimension_numbers = #tpu.dot_dimension_numbers<[1], [0], [0], [1], [0, 0, 1, 1], [], []>} : vector<8x256xbf16>, vector<256x256xbf16>, vector<8x256xf32> -> vector<8x256xf32>
    %7 = arith.addf %3, %6 : vector<8x256xf32>
    %c0_6 = arith.constant 0 : index
    %c0_7 = arith.constant 0 : index
    %8 = vector.load %arg5[%c0_6, %c0_7] : memref<8x256xf32, #tpu.memory_space<vmem>>, vector<8x256xf32>
    tpu.vector_store %arg5[%c0_6, %c0_7], %7 {strides = array<i32>} : memref<8x256xf32, #tpu.memory_space<vmem>>, vector<8x256xf32>,
    %c0_i32_8 = arith.constant 0 : i32
    %9 = arith.cmpi eq, %arg1, %c0_i32_8 : i32
    %10 = arith.extui %9 : i1 to i32
    %c0_i32_9 = arith.constant 0 : i32
    %11 = arith.cmpi ne, %10, %c0_i32_9 : i32
    scf.if %11 {
      %c0_10 = arith.constant 0 : index
      %c0_11 = arith.constant 0 : index
      %12 = vector.load %arg5[%c0_10, %c0_11] : memref<8x256xf32, #tpu.memory_space<vmem>>, vector<8x256xf32>
      %c0_12 = arith.constant 0 : index
      %c0_13 = arith.constant 0 : index
      %13 = vector.load %arg4[%c0_12, %c0_13] : memref<8x256xf32, #tpu.memory_space<vmem>>, vector<8x256xf32>
      tpu.vector_store %arg4[%c0_12, %c0_13], %12 {strides = array<i32>} : memref<8x256xf32, #tpu.memory_space<vmem>>, vector<8x256xf32>,
    } else {
    }
    return
  }
  func.func @transform_0(%arg0: i32, %arg1: i32) -> (i32, i32) {
    %c0_i32 = arith.constant 0 : i32
    %c0_i32_0 = arith.constant 0 : i32
    return %c0_i32, %arg1 : i32, i32
  }
  func.func @transform_1(%arg0: i32, %arg1: i32) -> (i32, i32) {
    %c0_i32 = arith.constant 0 : i32
    return %arg1, %arg0 : i32, i32
  }
  func.func @transform_2(%arg0: i32, %arg1: i32) -> (i32, i32) {
    %c0_i32 = arith.constant 0 : i32
    %c0_i32_0 = arith.constant 0 : i32
    return %c0_i32, %arg0 : i32, i32
  }
}

</mosaic_0001>

<bundles_post_ra>
// kernel: custom-call
= control target key start
LH: loop header
LB: loop body
LE: loop exit
PB: predicated region body
PF: predicated region fallthrough
CT: control target
= control target key end

     0   :  { %s6_s0 = inlined_call_operand.vmem [shape: f32[4096], index: 0, kind: output, shape index: {}]  }

// kernel: _fused_forward_flat.1
= control target key start
LH: loop header
LB: loop body
LE: loop exit
PB: predicated region body
PF: predicated region fallthrough
CT: control target
= control target key end

     0   :  { %s522_s0 = inlined_call_operand.vmem [shape: bf16[8,256], index: 0, kind: input, shape index: {}]   ;;  %s523_s1 = inlined_call_operand.vmem [shape: bf16[256,256], index: 1, kind: input, shape index: {}]   ;;  %s524_s2 = inlined_call_operand.hbm [shape: f32[8,256], index: 2, kind: output, shape index: {}]  }
   0x1   :  { %v321_v0 = vld [vmem:[%s523_s1 + $0x4] ss:$8 sps:$4 sm:$0xff]   ;;  %v323_v1 = vld [vmem:[%s523_s1] ss:$8 sps:$4 sm:$0xff]   ;;  %v324_v2 = vld [vmem:[%s523_s1 + $0x14] ss:$8 sps:$4 sm:$0xff]  }
   0x2   :  { %220 = vmatprep.subr.bf16.mxu0 %v321_v0  ;;  %v326_v3 = vld [vmem:[%s523_s1 + $0x10] ss:$8 sps:$4 sm:$0xff]   ;;  %v327_v4 = vld [vmem:[%s523_s1 + $0x24] ss:$8 sps:$4 sm:$0xff]   ;;  %v329_v5 = vld [vmem:[%s523_s1 + $0x20] ss:$8 sps:$4 sm:$0xff]  }
   0x3   :  { %221 = vmatpush1.bf16.msra.mxu0 %v323_v1  ;;  %v330_v6 = vld [vmem:[%s523_s1 + $0x34] ss:$8 sps:$4 sm:$0xff]   ;;  %v332_v7 = vld [vmem:[%s523_s1 + $0x30] ss:$8 sps:$4 sm:$0xff]   ;;  %v333_v8 = vld [vmem:[%s523_s1 + $0x44] ss:$8 sps:$4 sm:$0xff]  }
   0x4   :  { %222 = vmatprep.subr.bf16.mxu0 %v324_v2  ;;  %v335_v9 = vld [vmem:[%s523_s1 + $0x40] ss:$8 sps:$4 sm:$0xff]   ;;  %v336_v10 = vld [vmem:[%s523_s1 + $0x54] ss:$8 sps:$4 sm:$0xff]   ;;  %v338_v11 = vld [vmem:[%s523_s1 + $0x50] ss:$8 sps:$4 sm:$0xff]  }
   0x5   :  { %v339_v12 = vld [vmem:[%s523_s1 + $0x64] ss:$8 sps:$4 sm:$0xff]  }
   0x6   :  { %v20_v13 = vld [vmem:[%s522_s0] sm:$0xff] }
   0x7   :  { %223 = vmatpush1.bf16.msra.mxu0 %v326_v3 }
   0x8   :  { %224 = vmatprep.subr.bf16.mxu0 %v327_v4 }
   0xb   :  { %225 = vmatpush1.bf16.msra.mxu0 %v329_v5 }
   0xc   :  { %226 = vmatprep.subr.bf16.mxu0 %v330_v6 }
   0xf   :  { %227 = vmatpush1.bf16.msra.mxu0 %v332_v7 }
  0x10   :  { %228 = vmatprep.subr.bf16.mxu0 %v333_v8 }
  0x13   :  { %229 = vmatpush1.bf16.msra.mxu0 %v335_v9 }
  0x14   :  { %230 = vmatprep.subr.bf16.mxu0 %v336_v10 }
  0x15   :  { %7 = vsyncpa [#allocation4], 0  ;;  %v287_v14 = vcombine.high %v20_v13, %v20_v13  ;;  %v341_v15 = vld [vmem:[%s523_s1 + $0x60] ss:$8 sps:$4 sm:$0xff]   ;;  %v342_v16 = vld [vmem:[%s523_s1 + $0x74] ss:$8 sps:$4 sm:$0xff]   ;;  %v286_v34 = vcombine.low %v20_v13, %v20_v13 }
  0x16   :  { %v344_v17 = vld [vmem:[%s523_s1 + $0x70] ss:$8 sps:$4 sm:$0xff]   ;;  %v345_v18 = vld [vmem:[%s523_s1 + $0x84] ss:$8 sps:$4 sm:$0xff]   ;;  %v347_v19 = vld [vmem:[%s523_s1 + $0x80] ss:$8 sps:$4 sm:$0xff]  }
  0x17   :  { %231 = vmatpush1.bf16.msra.mxu0 %v338_v11  ;;  %252 = vmatprep.mubr.bf16.mxu0 %v287_v14  ;;  %v348_v20 = vld [vmem:[%s523_s1 + $0x94] ss:$8 sps:$4 sm:$0xff]   ;;  %v350_v21 = vld [vmem:[%s523_s1 + $0x90] ss:$8 sps:$4 sm:$0xff]   ;;  %v351_v22 = vld [vmem:[%s523_s1 + $0xa4] ss:$8 sps:$4 sm:$0xff]  }
  0x18   :  { %232 = vmatprep.subr.bf16.mxu0 %v339_v12  ;;  %v353_v23 = vld [vmem:[%s523_s1 + $0xa0] ss:$8 sps:$4 sm:$0xff]   ;;  %v354_v24 = vld [vmem:[%s523_s1 + $0xb4] ss:$8 sps:$4 sm:$0xff]   ;;  %v356_v25 = vld [vmem:[%s523_s1 + $0xb0] ss:$8 sps:$4 sm:$0xff]  }
  0x19   :  { %v357_v26 = vld [vmem:[%s523_s1 + $0xc4] ss:$8 sps:$4 sm:$0xff]   ;;  %v359_v27 = vld [vmem:[%s523_s1 + $0xc0] ss:$8 sps:$4 sm:$0xff]   ;;  %v360_v28 = vld [vmem:[%s523_s1 + $0xd4] ss:$8 sps:$4 sm:$0xff]  }
  0x1a   :  { %v362_v29 = vld [vmem:[%s523_s1 + $0xd0] ss:$8 sps:$4 sm:$0xff]   ;;  %v363_v30 = vld [vmem:[%s523_s1 + $0xe4] ss:$8 sps:$4 sm:$0xff]   ;;  %v365_v31 = vld [vmem:[%s523_s1 + $0xe0] ss:$8 sps:$4 sm:$0xff]  }
  0x1b   :  { %233 = vmatpush1.bf16.msra.mxu0 %v341_v15  ;;  %v366_v32 = vld [vmem:[%s523_s1 + $0xf4] ss:$8 sps:$4 sm:$0xff]   ;;  %v368_v33 = vld [vmem:[%s523_s1 + $0xf0] ss:$8 sps:$4 sm:$0xff]   ;;  %s395_s17 = smov [#allocation3]  }
  0x1c   :  { %234 = vmatprep.subr.bf16.mxu0 %v342_v16  ;;  %s278_s18 = sshll.u32 %s395_s17, 4  ;;  %s279_s18 = int_to_ptr.vmem [resolvable:$true] %s278_s18 }
  0x1d   :  { %s371_s19 = scalar_lea.vmem %s279_s18, 256  ;;  %p376_p1 = scmp.lt.s32.totalorder %s279_s18, %s279_s18 }
  0x1e   :  { %p372_p0 = scmp.ne.s32.totalorder %s279_s18, %s371_s19  ;;  %p377_p2 = scmp.lt.s32.totalorder %s371_s19, %s371_s19 }
  0x1f   :  { %235 = vmatpush1.bf16.msra.mxu0 %v344_v17 }
  0x20   :  { %236 = vmatprep.subr.bf16.mxu0 %v345_v18  ;;  %p378_p3 = por %p377_p2, %p376_p1 }
  0x22   :  { %p379_p4 = pnand %p378_p3, %p372_p0 }
  0x23   :  { %237 = vmatpush1.bf16.msra.mxu0 %v347_v19 }
  0x24   :  { %238 = vmatprep.subr.bf16.mxu0 %v348_v20 }
  0x27   :  { %239 = vmatpush1.bf16.msra.mxu0 %v350_v21 }
  0x28   :  { %240 = vmatprep.subr.bf16.mxu0 %v351_v22 }
  0x2b   :  { %241 = vmatpush1.bf16.msra.mxu0 %v353_v23 }
  0x2c   :  { %242 = vmatprep.subr.bf16.mxu0 %v354_v24 }
  0x2f   :  { %243 = vmatpush1.bf16.msra.mxu0 %v356_v25 }
  0x30   :  { %244 = vmatprep.subr.bf16.mxu0 %v357_v26 }
  0x33   :  { %245 = vmatpush1.bf16.msra.mxu0 %v359_v27 }
  0x34   :  { %246 = vmatprep.subr.bf16.mxu0 %v360_v28 }
  0x37   :  { %247 = vmatpush1.bf16.msra.mxu0 %v362_v29 }
  0x38   :  { %248 = vmatprep.subr.bf16.mxu0 %v363_v30 }
  0x3b   :  { %249 = vmatpush1.bf16.msra.mxu0 %v365_v31 }
  0x3c   :  { %250 = vmatprep.subr.bf16.mxu0 %v366_v32 }
  0x3f   :  { %251 = vmatpush1.bf16.msra.mxu0 %v368_v33 }
  0x42   :  { %253 = vmatmul.mubr.bf16.vlgmr.msra.gmra.mrb[0].mxu0 %v286_v34 }
 0x115   :  { %v254_v35 = vpop.f32.mrb[0].mxu0 }
 0x116   :  { %270 = vst [vmem:[#allocation3] sm:$0xff] %v254_v35  ;;  %v256_v36 = vpop.f32.mrb[1].mxu0 }
 0x117   :  { %271 = vst [vmem:[#allocation3 + $0x8] sm:$0xff] %v256_v36  ;;  %v258_v37 = vpop.f32.mrb[2].mxu0 }
 0x118   :  { %v259_v38 = vpop.f32.mrb[3].mxu0 }
 0x119   :  { %382 = shalt.err (!%p379_p4)
}
 0x11a   :  { %s383_s21 = scalar_lea.hbm %s524_s2, 256 }
 0x11b   :  { %p384_p5 = scmp.ne.s32.totalorder %s524_s2, %s383_s21  ;;  %p387_p6 = scmp.lt.u32.totalorder %s383_s21, %s524_s2 }
 0x11d   :  { %p389_p7 = pnand %p387_p6, %p384_p5 }
 0x11f   :  { %392 = shalt.err (!%p389_p7)
}
 0x120   :  { %281 = dma.vmem_to_hbm [thread:$0]  %s279_s18, 256, %s524_s2, [#allocation4]  }
 0x121   :  { %393 = dma.done.wait [#allocation4], 256  }
 0x122   :  { %394 = vsyncadd [#allocation4], 4294967040 }
 0x123   :  { %285 = vsyncpa [#allocation4], 1 }

</bundles_post_ra>
